<compile_context>
chip_gen: v7x
topology: tpu7x:2x2x1
jax: 0.10.0
libtpu: 0.0.40
codegen_flags: <defaults>
</compile_context>

<pallas_src>
import jax
import jax.numpy as jnp
from jax.experimental import pallas as pl
from jax.experimental.pallas import tpu as pltpu

_MiB = 1024 * 1024


def _round_up(x, m):
    return (x + m - 1) // m * m


def _vmem_capacity_bytes():
    """Physical VMEM of the attached TPU (fallback: 128 MiB, v5e/v6e-like)."""
    try:
        return int(pltpu.get_tpu_info().vmem_capacity_bytes)
    except Exception:
        return 128 * _MiB


def _pick_tile(dim, max_tile, min_tiles=1):
    """Pick (padded_dim, tile) such that:
      * tile is a multiple of 128 and <= max_tile,
      * tile divides padded_dim (padded_dim >= dim),
      * primary objective: minimal zero-padding beyond the mandatory 128-pad
        (no wasted zero-weight DMA),
      * then: >= min_tiles tiles if achievable at that padding,
      * then: the largest tile (fewest grid steps / per-step overhead)."""
    dim128 = _round_up(dim, 128)
    best_key, best = None, None
    for t in range(128, max(max_tile, 128) + 1, 128):
        padded = _round_up(dim, t)
        waste = padded - dim128
        ntiles = padded // t
        key = (waste, 0 if ntiles >= min_tiles else 1, -t)
        if best_key is None or key < best_key:
            best_key, best = key, (padded, t)
    return best


def _linear_kernel(x_ref, wt_ref, b_ref, o_ref, acc_ref):
    # x_ref:  (n_k, TI)  whole padded input, resident in VMEM (constant block)
    # wt_ref: (TI, TO)   streamed tile of padded W^T (MXU-native orientation)
    # b_ref:  (1, TO)    bias slice (block index constant across k -> no re-DMA)
    # o_ref:  (1, TO)    output tile (lane-dense over out_features)
    # acc_ref:(1, TO)    f32 accumulator, resident across the reduction axis
    k = pl.program_id(1)

    @pl.when(k == 0)
    def _():
        acc_ref[...] = jnp.zeros_like(acc_ref)

    x_blk = x_ref[pl.ds(k, 1), :]                        # (1, TI) reduction slice
    acc_ref[...] += jax.lax.dot_general(
        x_blk, wt_ref[...],
        dimension_numbers=(((1,), (0,)), ((), ())),      # (1,TI)@(TI,TO)->(1,TO)
        preferred_element_type=jnp.float32,
    )

    @pl.when(k == pl.num_programs(1) - 1)
    def _():
        o_ref[...] = (acc_ref[...] + b_ref[...]).astype(o_ref.dtype)


def prepare_linear_params(weights, bias, *, max_tile_in=None, max_tile_out=None):
    """One-time (init-time) packing of the parameters into the kernel layout.

    W is transposed to (in, out) and zero-padded to (i_pad, o_pad) exactly once,
    so forward() never re-reads/re-writes W in HBM. Tile sizes and the scoped
    VMEM limit are chosen per TPU generation.
    """
    out_features, in_features = weights.shape
    vmem_cap = _vmem_capacity_bytes()
    small_vmem = vmem_cap <= 64 * _MiB              # v7x-like (64 MiB VMEM, 2 TCs)
    scoped_cap = 40 * _MiB if small_vmem else 64 * _MiB

    if max_tile_in is None:
        max_tile_in = 2048
    if max_tile_out is None:
        max_tile_out = 1024 if small_vmem else 2048

    # On 2-TensorCore parts, make sure the "parallel" out axis has >= 2 tiles
    # (otherwise half the chip's HBM bandwidth idles); neutral on 1-TC chips.
    min_out_tiles = 2 if (small_vmem and _round_up(out_features, 128) >= 256) else 1
    o_pad, to = _pick_tile(out_features, max_tile_out, min_out_tiles)

    # Shrink the in-tile if the double-buffered W stream would blow the budget.
    w_budget = int(0.6 * scoped_cap)
    max_ti = max_tile_in
    while True:
        i_pad, ti = _pick_tile(in_features, max_ti, 1)
        if 2 * ti * to * 4 <= w_budget or max_ti <= 128:
            break
        max_ti -= 128

    # Pack the parameters (init-time only).
    f32 = jnp.float32
    wt = jnp.zeros((i_pad, o_pad), f32)
    wt = wt.at[:in_features, :out_features].set(weights.astype(f32).T)
    b_row = jnp.zeros((1, o_pad), f32).at[0, :out_features].set(bias.astype(f32))

    vmem_limit = int(min(
        scoped_cap,
        max(2 * ti * to * 4 + 2 * i_pad * 4 + 10 * to * 4 + 4 * _MiB, 16 * _MiB)))

    return {
        "wt": wt, "b_row": b_row,
        "in_features": in_features, "out_features": out_features,
        "i_pad": i_pad, "o_pad": o_pad, "ti": ti, "to": to,
        "vmem_limit": vmem_limit,
    }


def linear_forward(x, prepared):
    """Pallas equivalent of `Linear.forward`: torch.mv(weights, x) + bias,
    using the init-time packed parameters from `prepare_linear_params`."""
    p = prepared
    in_features, out_features = p["in_features"], p["out_features"]
    i_pad, o_pad, ti, to = p["i_pad"], p["o_pad"], p["ti"], p["to"]
    n_k = i_pad // ti
    n_o = o_pad // to

    x = x.astype(jnp.float32)
    if in_features != i_pad:
        x = jnp.zeros((i_pad,), jnp.float32).at[:in_features].set(x)
    x_tiles = x.reshape(n_k, ti)        # row k = the k-th reduction slice of x

    cost = pl.CostEstimate(
        flops=2 * in_features * out_features,
        transcendentals=0,
        bytes_accessed=i_pad * o_pad * 4 + i_pad * 4 + 2 * o_pad * 4,
    )

    out = pl.pallas_call(
        _linear_kernel,
        out_shape=jax.ShapeDtypeStruct((1, o_pad), jnp.float32),
        grid_spec=pltpu.PrefetchScalarGridSpec(
            num_scalar_prefetch=0,
            grid=(n_o, n_k),            # (out tiles [parallel], in tiles [arbitrary])
            in_specs=[
                # x fully resident in VMEM; sliced in-kernel along sublanes.
                pl.BlockSpec((n_k, ti), lambda o, k: (0, 0)),
                # W^T streamed in (TI, TO) tiles — the only large HBM stream.
                pl.BlockSpec((ti, to), lambda o, k: (k, o)),
                pl.BlockSpec((1, to), lambda o, k: (0, o)),
            ],
            out_specs=pl.BlockSpec((1, to), lambda o, k: (0, o)),
            scratch_shapes=[pltpu.VMEM((1, to), jnp.float32)],
        ),
        compiler_params=pltpu.CompilerParams(
            # Invariant: the f32 scratch accumulator is only correct while the
            # reduction axis (k) stays the innermost grid axis and "arbitrary".
            dimension_semantics=("parallel", "arbitrary"),
            vmem_limit_bytes=p["vmem_limit"],
        ),
        cost_estimate=cost,
    )(x_tiles, p["wt"], p["b_row"])

    return out[0, :out_features]


class PallasLinear:
    """Pallas/JAX analogue of the PyTorch `Linear` module (forward pass)."""

    def __init__(self, key, in_features, out_features):
        self.in_features = in_features
        self.out_features = out_features
        # Same init as the module: N(0,1) * sqrt(1/(in+out)), bias = 0.
        scale = jnp.sqrt(jnp.float32(1.0 / (in_features + out_features)))
        self.weights = jax.random.normal(
            key, (out_features, in_features), dtype=jnp.float32) * scale
        self.bias = jnp.zeros((out_features,), dtype=jnp.float32)
        # Init-time packing: pad + transpose W once so forward() never touches
        # W's layout again.
        self._prepared = prepare_linear_params(self.weights, self.bias)

    def forward(self, x):
        return linear_forward(x, self._prepared)

    __call__ = forward

    def param(self):
        # TODO(synk): backward() / derivative_layer_* gradient bookkeeping is
        # training-side state, not part of the forward pass; not implemented.
        return [self.weights, self.bias]


if __name__ == "__main__":
    key = jax.random.PRNGKey(0)

    # --- Small case matching the module's typical use (single grid step). ---
    k_param, k_x, key = jax.random.split(key, 3)
    lin = PallasLinear(k_param, 32, 16)
    x = jax.random.normal(k_x, (32,), dtype=jnp.float32)

    y = jax.block_until_ready(lin(x))
    y_ref = lin.weights @ x + lin.bias
    assert y.shape == (16,)
    assert jnp.allclose(y, y_ref, atol=1e-4, rtol=1e-4)

    # --- Larger, non-128-multiple out_features: exercises 128-padding (not
    #     tile-padding), W^T streaming and the f32 reduction accumulator. ---
    k_param, k_x = jax.random.split(key)
    lin2 = PallasLinear(k_param, 1024, 640)
    x2 = jax.random.normal(k_x, (1024,), dtype=jnp.float32)

    y2 = jax.block_until_ready(lin2(x2))
    y2_ref = lin2.weights @ x2 + lin2.bias
    assert y2.shape == (640,)
    assert jnp.allclose(y2, y2_ref, atol=1e-3, rtol=1e-4)

    print("KERNEL_OK")
</pallas_src>

<mosaic_0001>
module attributes {stable_mosaic.version = 11 : i64} {
  func.func @_linear_kernel(%arg0: i32, %arg1: i32, %arg2: memref<1x128xf32, #tpu.memory_space<vmem>>, %arg3: memref<128x128xf32, #tpu.memory_space<vmem>>, %arg4: memref<1x128xf32, #tpu.memory_space<vmem>>, %arg5: memref<1x128xf32, #tpu.memory_space<vmem>>, %arg6: memref<1x128xf32, #tpu.memory_space<vmem>>) attributes {dimension_semantics = [#tpu.dimension_semantics<parallel>, #tpu.dimension_semantics<arbitrary>], iteration_bounds = array<i64: 1, 1>, scalar_prefetch = 0 : i64, scratch_operands = 1 : i64, tpu.core_type = #tpu.core_type<tc>, window_params = [{pipeline_mode = #tpu.pipeline_mode<synchronous>, transform_indices = @transform_0, window_bounds = array<i64: 1, 128>}, {transform_indices = @transform_1, window_bounds = array<i64: 128, 128>}, {transform_indices = @transform_2, window_bounds = array<i64: 1, 128>}, {transform_indices = @transform_3, window_bounds = array<i64: 1, 128>}]} {
    %c0_i32 = arith.constant 0 : i32
    %0 = arith.cmpi eq, %arg1, %c0_i32 : i32
    %1 = arith.extui %0 : i1 to i32
    %c0_i32_0 = arith.constant 0 : i32
    %2 = arith.cmpi ne, %1, %c0_i32_0 : i32
    scf.if %2 {
      %cst_9 = arith.constant 0.000000e+00 : f32
      %13 = vector.broadcast %cst_9 : f32 to vector<1x128xf32>
      %c0_10 = arith.constant 0 : index
      %c0_11 = arith.constant 0 : index
      %14 = vector.load %arg6[%c0_10, %c0_11] : memref<1x128xf32, #tpu.memory_space<vmem>>, vector<1x128xf32>
      tpu.vector_store %arg6[%c0_10, %c0_11], %13 {strides = array<i32>} : memref<1x128xf32, #tpu.memory_space<vmem>>, vector<1x128xf32>,
    } else {
    }
    %3 = arith.index_cast %arg1 : i32 to index
    %c0 = arith.constant 0 : index
    %4 = vector.load %arg2[%3, %c0] : memref<1x128xf32, #tpu.memory_space<vmem>>, vector<1x128xf32>
    %c0_1 = arith.constant 0 : index
    %c0_2 = arith.constant 0 : index
    %5 = vector.load %arg6[%c0_1, %c0_2] : memref<1x128xf32, #tpu.memory_space<vmem>>, vector<1x128xf32>
    %c0_3 = arith.constant 0 : index
    %c0_4 = arith.constant 0 : index
    %6 = vector.load %arg3[%c0_3, %c0_4] : memref<128x128xf32, #tpu.memory_space<vmem>>, vector<128x128xf32>
    %cst = arith.constant dense<0.000000e+00> : vector<1x128xf32>
    %7 = tpu.matmul %4, %6, %cst {dimension_numbers = #tpu.dot_dimension_numbers<[1], [0], [0], [1], [0, 0, 1, 1], [], []>} : vector<1x128xf32>, vector<128x128xf32>, vector<1x128xf32> -> vector<1x128xf32>
    %8 = arith.addf %5, %7 : vector<1x128xf32>
    %c0_5 = arith.constant 0 : index
    %c0_6 = arith.constant 0 : index
    %9 = vector.load %arg6[%c0_5, %c0_6] : memref<1x128xf32, #tpu.memory_space<vmem>>, vector<1x128xf32>
    tpu.vector_store %arg6[%c0_5, %c0_6], %8 {strides = array<i32>} : memref<1x128xf32, #tpu.memory_space<vmem>>, vector<1x128xf32>,
    %c0_i32_7 = arith.constant 0 : i32
    %10 = arith.cmpi eq, %arg1, %c0_i32_7 : i32
    %11 = arith.extui %10 : i1 to i32
    %c0_i32_8 = arith.constant 0 : i32
    %12 = arith.cmpi ne, %11, %c0_i32_8 : i32
    scf.if %12 {
      %c0_9 = arith.constant 0 : index
      %c0_10 = arith.constant 0 : index
      %13 = vector.load %arg6[%c0_9, %c0_10] : memref<1x128xf32, #tpu.memory_space<vmem>>, vector<1x128xf32>
      %c0_11 = arith.constant 0 : index
      %c0_12 = arith.constant 0 : index
      %14 = vector.load %arg4[%c0_11, %c0_12] : memref<1x128xf32, #tpu.memory_space<vmem>>, vector<1x128xf32>
      %15 = arith.addf %13, %14 : vector<1x128xf32>
      %c0_13 = arith.constant 0 : index
      %c0_14 = arith.constant 0 : index
      %16 = vector.load %arg5[%c0_13, %c0_14] : memref<1x128xf32, #tpu.memory_space<vmem>>, vector<1x128xf32>
      tpu.vector_store %arg5[%c0_13, %c0_14], %15 {strides = array<i32>} : memref<1x128xf32, #tpu.memory_space<vmem>>, vector<1x128xf32>,
    } else {
    }
    return
  }
  func.func @transform_0(%arg0: i32, %arg1: i32) -> (i32, i32) {
    %c0_i32 = arith.constant 0 : i32
    %c0_i32_0 = arith.constant 0 : i32
    %c0_i32_1 = arith.constant 0 : i32
    return %c0_i32, %c0_i32_0 : i32, i32
  }
  func.func @transform_1(%arg0: i32, %arg1: i32) -> (i32, i32) {
    %c0_i32 = arith.constant 0 : i32
    return %arg1, %arg0 : i32, i32
  }
  func.func @transform_2(%arg0: i32, %arg1: i32) -> (i32, i32) {
    %c0_i32 = arith.constant 0 : i32
    %c0_i32_0 = arith.constant 0 : i32
    return %c0_i32, %arg0 : i32, i32
  }
  func.func @transform_3(%arg0: i32, %arg1: i32) -> (i32, i32) {
    %c0_i32 = arith.constant 0 : i32
    %c0_i32_0 = arith.constant 0 : i32
    return %c0_i32, %arg0 : i32, i32
  }
}

</mosaic_0001>

<bundles_post_ra>
// kernel: tpu_custom_call.1
= control target key start
LH: loop header
LB: loop body
LE: loop exit
PB: predicated region body
PF: predicated region fallthrough
CT: control target
= control target key end

     0   :  { %8 = vsyncpa [#allocation4], 0  ;;  %s389_s0 = inlined_call_operand.hbm [shape: f32[1,128], index: 0, kind: input, shape index: {}]   ;;  %s390_s1 = inlined_call_operand.hbm [shape: f32[128,128], index: 1, kind: input, shape index: {}]   ;;  %s391_s2 = inlined_call_operand.vmem [shape: f32[1,128], index: 2, kind: input, shape index: {}]   ;;  %s392_s3 = inlined_call_operand.hbm [shape: f32[1,128], index: 3, kind: output, shape index: {}]  }
   0x1   :  { %9 = vsyncpa [#allocation7], 0 }
   0x2   :  { %10 = vsyncpa [#allocation5], 0  ;;  %s315_s12 = smov [#allocation3]   ;;  %s316_s14 = smov [#allocation6]  }
   0x3   :  { %s17_s13 = sshll.u32 %s315_s12, 4  ;;  %s26_s15 = sshll.u32 %s316_s14, 4  ;;  %s18_s13 = int_to_ptr.vmem [resolvable:$true] %s17_s13  ;;  %s343_s15 = int_to_ptr.vmem [resolvable:$true] %s26_s15 }
   0x4   :  { %s243_s18 = scalar_lea.hbm %s389_s0, 16 }
   0x5   :  { %p244_p0 = scmp.ne.s32.totalorder %s389_s0, %s243_s18  ;;  %p247_p1 = scmp.lt.u32.totalorder %s243_s18, %s389_s0 }
   0x7   :  { %p249_p2 = pnand %p247_p1, %p244_p0 }
   0x9   :  { %252 = shalt.err (!%p249_p2)
}
   0xa   :  { %s253_s23 = scalar_lea.vmem %s18_s13, 16  ;;  %s257_s24 = scalar_lea.vmem %s18_s13, 32 }
   0xb   :  { %p254_p3 = scmp.ne.s32.totalorder %s18_s13, %s253_s23  ;;  %p258_p4 = scmp.lt.s32.totalorder %s18_s13, %s18_s13 }
   0xc   :  { %p259_p5 = scmp.lt.s32.totalorder %s257_s24, %s253_s23 }
   0xe   :  { %p260_p6 = por %p259_p5, %p258_p4 }
  0x10   :  { %p261_p7 = pnand %p260_p6, %p254_p3 }
  0x12   :  { %264 = shalt.err (!%p261_p7)
}
  0x13   :  { %20 = dma.hbm_to_vmem [thread:$0]  %s389_s0, 16, %s18_s13, [#allocation4]  }
  0x14   :  { %s265_s29 = scalar_lea.hbm %s390_s1, 2048 }
  0x15   :  { %p266_p8 = scmp.ne.s32.totalorder %s390_s1, %s265_s29  ;;  %p269_p9 = scmp.lt.u32.totalorder %s265_s29, %s390_s1 }
  0x17   :  { %p271_p10 = pnand %p269_p9, %p266_p8 }
  0x19   :  { %274 = shalt.err (!%p271_p10)
}
  0x1a   :  { %s275_s7 = scalar_lea.vmem %s343_s15, 2048  ;;  %p280_p12 = scmp.lt.s32.totalorder %s343_s15, %s343_s15 }
  0x1b   :  { %p276_p11 = scmp.ne.s32.totalorder %s343_s15, %s275_s7  ;;  %p281_p13 = scmp.lt.s32.totalorder %s275_s7, %s275_s7 }
  0x1d   :  { %p282_p0 = por %p281_p13, %p280_p12 }
  0x1f   :  { %p283_p1 = pnand %p282_p0, %p276_p11 }
  0x21   :  { %286 = shalt.err (!%p283_p1)
}
  0x22   :  { %s317_s0 = smov 128   ;;  %s318_s8 = smov 8  }
  0x23   :  { %32 = dma.hbm_to_vmem [thread:$0]  %s390_s1, 2048, %s343_s15, [#allocation7], %s317_s0, %s317_s0, %s318_s8  }
  0x24   :  { %309 = dma.done.wait [#allocation4], 16  }
  0x25   :  { %310 = vsyncadd [#allocation4], 4294967280 }
  0x26   :  { %311 = dma.done.wait [#allocation7], 2048  }
  0x27   :  { %312 = vsyncadd [#allocation7], 4294965248  ;;  %v319_v0 = vmov 0.0|0.0   ;;  %v320_v1 = vmov 0.0   ;;  %vm321_vm0 = vmmov 0   ;;  %v48_v2 = vld [vmem:[#allocation6] sm:$0xff] }
  0x28   :  { %211 = vmatprep.subr.bf16.mxu0 %v319_v0  ;;  %45 = vst [vmem:[#allocation2] sm:$0x1] %v320_v1  ;;  %208 = vmatprep.mubr.msk.f32.mxu0 %vm321_vm0, %v320_v1  ;;  %v49_v3 = vld [vmem:[#allocation6 + $0x8] sm:$0xff]  ;;  %v50_v4 = vld [vmem:[#allocation6 + $0x10] sm:$0xff]  ;;  %v51_v6 = vld [vmem:[#allocation6 + $0x18] sm:$0xff]  ;;  %s322_s12 = smov [#allocation8]  }
  0x29   :  { %v212_v5 = vpack.c.bf16 %v49_v3, %v48_v2  ;;  %v215_v7 = vpack.c.bf16 %v51_v6, %v50_v4  ;;  %v52_v8 = vld [vmem:[#allocation6 + $0x20] sm:$0xff]  ;;  %v53_v9 = vld [vmem:[#allocation6 + $0x28] sm:$0xff]  ;;  %v54_v11 = vld [vmem:[#allocation6 + $0x30] sm:$0xff]  ;;  %s149_s13 = sshll.u32 %s322_s12, 4  ;;  %s150_s13 = int_to_ptr.vmem [resolvable:$true] %s149_s13 }
  0x2a   :  { %v218_v10 = vpack.c.bf16 %v53_v9, %v52_v8  ;;  %v55_v12 = vld [vmem:[#allocation6 + $0x38] sm:$0xff]  ;;  %v56_v14 = vld [vmem:[#allocation6 + $0x40] sm:$0xff]  ;;  %v57_v15 = vld [vmem:[#allocation6 + $0x48] sm:$0xff]  ;;  %s287_s14 = scalar_lea.vmem %s150_s13, 16  ;;  %s291_s15 = scalar_lea.vmem %s150_s13, 32 }
  0x2b   :  { %213 = vmatpush3.bf16.msra.mxu0 %v212_v5  ;;  %v221_v13 = vpack.c.bf16 %v55_v12, %v54_v11  ;;  %v224_v16 = vpack.c.bf16 %v57_v15, %v56_v14  ;;  %v58_v17 = vld [vmem:[#allocation6 + $0x50] sm:$0xff]  ;;  %v59_v18 = vld [vmem:[#allocation6 + $0x58] sm:$0xff]  ;;  %v60_v20 = vld [vmem:[#allocation6 + $0x60] sm:$0xff]  ;;  %p288_p2 = scmp.ne.s32.totalorder %s150_s13, %s287_s14  ;;  %p292_p3 = scmp.lt.s32.totalorder %s150_s13, %s150_s13 }
  0x2c   :  { %214 = vmatprep.subr.bf16.mxu0 %v319_v0  ;;  %v227_v19 = vpack.c.bf16 %v59_v18, %v58_v17  ;;  %v61_v21 = vld [vmem:[#allocation6 + $0x68] sm:$0xff]  ;;  %v62_v23 = vld [vmem:[#allocation6 + $0x70] sm:$0xff]  ;;  %v63_v24 = vld [vmem:[#allocation6 + $0x78] sm:$0xff]  ;;  %p293_p4 = scmp.lt.s32.totalorder %s291_s15, %s287_s14 }
  0x2d   :  { %v230_v22 = vpack.c.bf16 %v61_v21, %v60_v20  ;;  %v233_v25 = vpack.c.bf16 %v63_v24, %v62_v23  ;;  %v46_v26 = vld [vmem:[#allocation3] sm:$0x1]  ;;  %v140_v31 = vld [vmem:[%s391_s2] sm:$0x1] }
  0x2e   :  { %p294_p5 = por %p293_p4, %p292_p3 }
  0x2f   :  { %216 = vmatpush3.bf16.msra.mxu0 %v215_v7  ;;  %v47_v27 = vld [vmem:[#allocation2] sm:$0x1] }
  0x30   :  { %217 = vmatprep.subr.bf16.mxu0 %v319_v0  ;;  %p295_p6 = pnand %p294_p5, %p288_p2 }
  0x33   :  { %219 = vmatpush3.bf16.msra.mxu0 %v218_v10 }
  0x34   :  { %220 = vmatprep.subr.bf16.mxu0 %v319_v0 }
  0x37   :  { %222 = vmatpush3.bf16.msra.mxu0 %v221_v13 }
  0x38   :  { %223 = vmatprep.subr.bf16.mxu0 %v319_v0 }
  0x3b   :  { %225 = vmatpush3.bf16.msra.mxu0 %v224_v16 }
  0x3c   :  { %226 = vmatprep.subr.bf16.mxu0 %v319_v0 }
  0x3f   :  { %228 = vmatpush3.bf16.msra.mxu0 %v227_v19 }
  0x40   :  { %229 = vmatprep.subr.bf16.mxu0 %v319_v0 }
  0x43   :  { %231 = vmatpush3.bf16.msra.mxu0 %v230_v22 }
  0x44   :  { %232 = vmatprep.subr.bf16.mxu0 %v319_v0 }
  0x47   :  { %234 = vmatpush3.bf16.msra.mxu0 %v233_v25 }
  0x4a   :  { %209 = vmatmul.mubr.f32.vlgmr.msra.gmra.mrb[0].mxu0 %v46_v26 }
 0x11d   :  { %v130_v28 = vpop.f32.mrb[0].mxu0 }
 0x11e   :  { %v134_v29 = vadd.f32 %v130_v28, %v47_v27  ;;  %v210_v30 = vpop.f32.mrb[1].mxu0 }
 0x120   :  { %135 = vst [vmem:[#allocation2] sm:$0x1] %v134_v29 }
 0x127   :  { %v139_v32 = vld [vmem:[#allocation2] sm:$0x1] }
 0x128   :  { %v141_v33 = vadd.f32 %v140_v31, %v139_v32 }
 0x12a   :  { %142 = vst [vmem:[#allocation8] sm:$0x1] %v141_v33 }
 0x12b   :  { %298 = shalt.err (!%p295_p6)
}
 0x12c   :  { %s299_s18 = scalar_lea.hbm %s392_s3, 16 }
 0x12d   :  { %p300_p7 = scmp.ne.s32.totalorder %s392_s3, %s299_s18  ;;  %p303_p8 = scmp.lt.u32.totalorder %s299_s18, %s392_s3 }
 0x12f   :  { %p305_p9 = pnand %p303_p8, %p300_p7 }
 0x131   :  { %308 = shalt.err (!%p305_p9)
}
 0x132   :  { %152 = dma.vmem_to_hbm [thread:$0]  %s150_s13, 16, %s392_s3, [#allocation5]  }
 0x133   :  { %313 = dma.done.wait [#allocation5], 16  }
 0x134   :  { %314 = vsyncadd [#allocation5], 4294967280 }
 0x135   :  { %156 = vsyncpa [#allocation4], 1 }
 0x136   :  { %157 = vsyncpa [#allocation7], 1 }
 0x137   :  { %158 = vsyncpa [#allocation5], 1 }

</bundles_post_ra>
